<compile_context>
chip_gen: v7x
topology: tpu7x:2x2x1
jax: 0.10.0
libtpu: 0.0.40
codegen_flags: <defaults>
</compile_context>

<pallas_src>
import math

import jax
import jax.numpy as jnp
from jax import lax
from jax.experimental import pallas as pl
from jax.experimental.pallas import tpu as pltpu

# Problem sizes (from the module definition).
D_MODEL = 3
NUM_HEADS = 1
D_K = D_MODEL // NUM_HEADS
SEQ_LEN = 6

# In-kernel padded tile sizes (sublane=8, lane=128 alignment).
S_PAD = 8
D_PAD = 128


def _attention_kernel(x_ref, w_ref, o_ref, xp_ref):
    """Fused QKV projection (+bias, +scale), QK^T, softmax, AV — all in-kernel.

    x_ref : (SEQ_LEN, D_MODEL) f32
    w_ref : (D_PAD, 3*D_PAD)   f32 fused [Q*scale | K | V], biases in row D_MODEL
    o_ref : (SEQ_LEN, D_MODEL) f32
    xp_ref: (S_PAD, D_PAD)     f32 VMEM scratch (zero-extended x)
    """
    # Zero-extend x into an aligned (8,128) tile; lane D_MODEL carries the
    # constant 1.0 that multiplies the bias row of the fused weight.
    lane = lax.broadcasted_iota(jnp.int32, (S_PAD, D_PAD), 1)
    xp_ref[...] = jnp.where(lane == D_MODEL, 1.0, 0.0).astype(jnp.float32)
    xp_ref[0:SEQ_LEN, 0:D_MODEL] = x_ref[...]
    x = xp_ref[...]                                           # (S_PAD, D_PAD)

    # One 384-wide MXU dot = Q (pre-scaled), K, V projections + biases.
    qkv = jnp.dot(x, w_ref[...], preferred_element_type=jnp.float32)
    q = qkv[:, 0 * D_PAD:1 * D_PAD]                           # (S_PAD, D_PAD)
    k = qkv[:, 1 * D_PAD:2 * D_PAD]
    v = qkv[:, 2 * D_PAD:3 * D_PAD]

    # Scores: contract the last axis of both q and k (no materialized
    # transpose). The 1/sqrt(d_k) scale is already folded into q.
    scores = lax.dot_general(q, k, (((1,), (1,)), ((), ())),
                             preferred_element_type=jnp.float32)  # (S_PAD, S_PAD)

    # Mask padded key columns (>= seq_len) with a large finite negative.
    col = lax.broadcasted_iota(jnp.int32, (S_PAD, S_PAD), 1)
    scores = jnp.where(col < SEQ_LEN, scores, -1e30)

    # Row-wise softmax (exact reciprocal keeps the 1e-5 tolerance).
    m = jnp.max(scores, axis=-1, keepdims=True)
    e = jnp.exp(scores - m)
    denom = jnp.sum(e, axis=-1, keepdims=True)
    attn = e * pl.reciprocal(denom, approx=False)

    # Weighted sum of values; store only the valid (6,3) window.
    out = jnp.dot(attn, v, preferred_element_type=jnp.float32)
    o_ref[...] = out[0:SEQ_LEN, 0:D_MODEL]


_VMEM = pl.BlockSpec(memory_space=pltpu.MemorySpace.VMEM)


def _single_call(x, w_fused):
    """Single-sequence path: whole-array VMEM operands, no grid machinery."""
    return pl.pallas_call(
        _attention_kernel,
        out_shape=jax.ShapeDtypeStruct((SEQ_LEN, D_MODEL), jnp.float32),
        in_specs=[_VMEM, _VMEM],
        out_specs=_VMEM,
        scratch_shapes=[pltpu.VMEM((S_PAD, D_PAD), jnp.float32)],
    )(x, w_fused)


def _batched_call(xb, w_fused):
    """Batched path: grid=(B,), weights VMEM-resident across all grid steps."""
    batch = xb.shape[0]
    return pl.pallas_call(
        _attention_kernel,
        out_shape=jax.ShapeDtypeStruct((batch, SEQ_LEN, D_MODEL), jnp.float32),
        grid=(batch,),
        in_specs=[
            pl.BlockSpec((None, SEQ_LEN, D_MODEL), lambda b: (b, 0, 0)),
            pl.BlockSpec((D_PAD, 3 * D_PAD), lambda b: (0, 0)),
        ],
        out_specs=pl.BlockSpec((None, SEQ_LEN, D_MODEL), lambda b: (b, 0, 0)),
        scratch_shapes=[pltpu.VMEM((S_PAD, D_PAD), jnp.float32)],
        compiler_params=pltpu.CompilerParams(
            dimension_semantics=("parallel",)),
    )(xb, w_fused)


def prepare_fused_weight(wq, bq, wk, bk, wv, bv):
    """One-time prep: transpose to (in,out), fuse Q/K/V, fold scale+bias, pad.

    Layout: lanes [0:128)->Q*scale, [128:256)->K, [256:384)->V; weight rows
    0..D_MODEL-1 hold W^T, row D_MODEL holds the bias (multiplied by the
    constant 1.0 the kernel plants at input lane D_MODEL).
    """
    scale = 1.0 / math.sqrt(float(D_K))
    blocks = (
        (wq.T * scale, bq * scale),   # scale folded into Q weights AND bias
        (wk.T, bk),
        (wv.T, bv),
    )
    w = jnp.zeros((D_PAD, 3 * D_PAD), jnp.float32)
    for idx, (wi, bi) in enumerate(blocks):
        off = idx * D_PAD
        w = w.at[:D_MODEL, off:off + D_MODEL].set(wi.astype(jnp.float32))
        w = w.at[D_MODEL, off:off + D_MODEL].set(bi.astype(jnp.float32))
    return w


def make_self_attention(wq, bq, wk, bk, wv, bv):
    """Builds the forward fns; all weight plumbing is hoisted here (once)."""
    w_fused = jax.device_put(prepare_fused_weight(wq, bq, wk, bk, wv, bv))

    @jax.jit
    def forward(x):
        # Matches TorchSelfAttentionGPU.forward for a (seq_len, d_model) input.
        return _single_call(x.astype(jnp.float32), w_fused)

    @jax.jit
    def forward_batched(xb):
        # Throughput path: amortizes launch + weight DMA over B sequences.
        return _batched_call(xb.astype(jnp.float32), w_fused)

    return forward, forward_batched


def _reference(x, wq, bq, wk, bk, wv, bv):
    """Pure-JAX reference mirroring TorchSelfAttentionGPU.forward."""
    q = x @ wq.T + bq
    k = x @ wk.T + bk
    v = x @ wv.T + bv
    scores = (q @ k.T) / jnp.sqrt(jnp.float32(D_K))
    attn = jax.nn.softmax(scores, axis=-1)
    return attn @ v


def _init_linear(key, out_features, in_features):
    """Deterministic init mimicking torch.nn.Linear default (U[-1/sqrt(in), ..])."""
    kw, kb = jax.random.split(key)
    bound = 1.0 / math.sqrt(in_features)
    w = jax.random.uniform(kw, (out_features, in_features), jnp.float32,
                           minval=-bound, maxval=bound)
    b = jax.random.uniform(kb, (out_features,), jnp.float32,
                           minval=-bound, maxval=bound)
    return w, b


if __name__ == "__main__":
    root = jax.random.PRNGKey(0)
    kx, kq, kk, kv, kf, kxb = jax.random.split(root, 6)

    # Deterministic parameters (fc_out initialized for parity with __init__,
    # but unused — forward() never applies it).
    wq, bq = _init_linear(kq, D_MODEL, D_MODEL)
    wk, bk = _init_linear(kk, D_MODEL, D_MODEL)
    wv, bv = _init_linear(kv, D_MODEL, D_MODEL)
    _wf, _bf = _init_linear(kf, D_MODEL, D_MODEL)  # fc_out (unused in forward)

    forward, forward_batched = make_self_attention(wq, bq, wk, bk, wv, bv)

    # --- single sequence (the module's forward signature) ---
    x = jax.random.normal(kx, (SEQ_LEN, D_MODEL), jnp.float32)
    out = jax.block_until_ready(forward(x))
    ref = _reference(x, wq, bq, wk, bk, wv, bv)
    assert out.shape == (SEQ_LEN, D_MODEL), out.shape
    assert jnp.allclose(out, ref, atol=1e-5, rtol=1e-5), (
        "single-seq mismatch vs reference:\n%s\n%s" % (out, ref))

    # --- batched path (grid over B, weights stay VMEM-resident) ---
    B = 4
    xb = jax.random.normal(kxb, (B, SEQ_LEN, D_MODEL), jnp.float32)
    outb = jax.block_until_ready(forward_batched(xb))
    refb = jax.vmap(lambda xi: _reference(xi, wq, bq, wk, bk, wv, bv))(xb)
    assert outb.shape == (B, SEQ_LEN, D_MODEL), outb.shape
    assert jnp.allclose(outb, refb, atol=1e-5, rtol=1e-5), (
        "batched mismatch vs reference")

    print("KERNEL_OK")
</pallas_src>

<mosaic_0001>
module attributes {stable_mosaic.version = 11 : i64} {
  func.func @_attention_kernel(%arg0: memref<6x3xf32, #tpu.memory_space<vmem>>, %arg1: memref<128x384xf32, #tpu.memory_space<vmem>>, %arg2: memref<6x3xf32, #tpu.memory_space<vmem>>, %arg3: memref<8x128xf32, #tpu.memory_space<vmem>>) attributes {dimension_semantics = [], scalar_prefetch = 0 : i64, scratch_operands = 1 : i64, tpu.core_type = #tpu.core_type<tc>} {
    %0 = tpu.iota {dimensions = array<i32: 1>} : vector<8x128xi32>
    %c3_i32 = arith.constant 3 : i32
    %1 = vector.broadcast %c3_i32 : i32 to vector<8x128xi32>
    %2 = arith.cmpi eq, %0, %1 : vector<8x128xi32>
    %cst = arith.constant 1.000000e+00 : f32
    %cst_0 = arith.constant 0.000000e+00 : f32
    %3 = vector.broadcast %cst : f32 to vector<8x128xf32>
    %4 = vector.broadcast %cst_0 : f32 to vector<8x128xf32>
    %5 = arith.select %2, %3, %4 : vector<8x128xi1>, vector<8x128xf32>
    %c0 = arith.constant 0 : index
    %c0_1 = arith.constant 0 : index
    %6 = vector.load %arg3[%c0, %c0_1] : memref<8x128xf32, #tpu.memory_space<vmem>>, vector<8x128xf32>
    tpu.vector_store %arg3[%c0, %c0_1], %5 {strides = array<i32>} : memref<8x128xf32, #tpu.memory_space<vmem>>, vector<8x128xf32>,
    %c0_2 = arith.constant 0 : index
    %c0_3 = arith.constant 0 : index
    %7 = vector.load %arg0[%c0_2, %c0_3] : memref<6x3xf32, #tpu.memory_space<vmem>>, vector<6x3xf32>
    %c0_4 = arith.constant 0 : index
    %c0_5 = arith.constant 0 : index
    %8 = vector.load %arg3[%c0_4, %c0_5] : memref<8x128xf32, #tpu.memory_space<vmem>>, vector<6x3xf32>
    tpu.vector_store %arg3[%c0_4, %c0_5], %7 {strides = array<i32>} : memref<8x128xf32, #tpu.memory_space<vmem>>, vector<6x3xf32>,
    %c0_6 = arith.constant 0 : index
    %c0_7 = arith.constant 0 : index
    %9 = vector.load %arg3[%c0_6, %c0_7] : memref<8x128xf32, #tpu.memory_space<vmem>>, vector<8x128xf32>
    %c0_8 = arith.constant 0 : index
    %c0_9 = arith.constant 0 : index
    %10 = vector.load %arg1[%c0_8, %c0_9] : memref<128x384xf32, #tpu.memory_space<vmem>>, vector<128x384xf32>
    %cst_10 = arith.constant dense<0.000000e+00> : vector<8x384xf32>
    %11 = tpu.matmul %9, %10, %cst_10 {dimension_numbers = #tpu.dot_dimension_numbers<[1], [0], [0], [1], [0, 0, 1, 1], [], []>} : vector<8x128xf32>, vector<128x384xf32>, vector<8x384xf32> -> vector<8x384xf32>
    %12 = vector.extract_strided_slice %11 {offsets = [0, 0], sizes = [8, 128], strides = [1, 1]} : vector<8x384xf32> to vector<8x128xf32>
    %13 = vector.extract_strided_slice %11 {offsets = [0, 128], sizes = [8, 128], strides = [1, 1]} : vector<8x384xf32> to vector<8x128xf32>
    %14 = vector.extract_strided_slice %11 {offsets = [0, 256], sizes = [8, 128], strides = [1, 1]} : vector<8x384xf32> to vector<8x128xf32>
    %cst_11 = arith.constant dense<0.000000e+00> : vector<8x8xf32>
    %15 = tpu.matmul %12, %13, %cst_11 {dimension_numbers = #tpu.dot_dimension_numbers<[1], [1], [0], [0], [0, 0, 1, 0], [], []>} : vector<8x128xf32>, vector<8x128xf32>, vector<8x8xf32> -> vector<8x8xf32>
    %16 = tpu.iota {dimensions = array<i32: 1>} : vector<8x8xi32>
    %c6_i32 = arith.constant 6 : i32
    %17 = vector.broadcast %c6_i32 : i32 to vector<8x8xi32>
    %18 = arith.cmpi slt, %16, %17 : vector<8x8xi32>
    %cst_12 = arith.constant -1.000000e+30 : f32
    %19 = vector.broadcast %cst_12 : f32 to vector<8x8xf32>
    %20 = arith.select %18, %15, %19 : vector<8x8xi1>, vector<8x8xf32>
    %cst_13 = arith.constant dense<0xFF800000> : vector<8xf32>
    %21 = vector.multi_reduction <maximumf>, %20, %cst_13 [1] : vector<8x8xf32> to vector<8xf32>
    %22 = vector.shape_cast %21 : vector<8xf32> to vector<8x1xf32>
    %23 = vector.broadcast %22 : vector<8x1xf32> to vector<8x8xf32>
    %24 = arith.subf %20, %23 : vector<8x8xf32>
    %25 = math.exp %24 : vector<8x8xf32>
    %cst_14 = arith.constant dense<0.000000e+00> : vector<8xf32>
    %26 = vector.multi_reduction <add>, %25, %cst_14 [1] : vector<8x8xf32> to vector<8xf32>
    %27 = vector.shape_cast %26 : vector<8xf32> to vector<8x1xf32>
    %28 = tpu.reciprocal %27 : vector<8x1xf32> -> vector<8x1xf32>
    %29 = vector.broadcast %28 : vector<8x1xf32> to vector<8x8xf32>
    %30 = arith.mulf %25, %29 : vector<8x8xf32>
    %cst_15 = arith.constant dense<0.000000e+00> : vector<8x128xf32>
    %31 = tpu.matmul %30, %14, %cst_15 {dimension_numbers = #tpu.dot_dimension_numbers<[1], [0], [0], [1], [0, 0, 1, 1], [], []>} : vector<8x8xf32>, vector<8x128xf32>, vector<8x128xf32> -> vector<8x128xf32>
    %32 = vector.extract_strided_slice %31 {offsets = [0, 0], sizes = [6, 3], strides = [1, 1]} : vector<8x128xf32> to vector<6x3xf32>
    %c0_16 = arith.constant 0 : index
    %c0_17 = arith.constant 0 : index
    %33 = vector.load %arg2[%c0_16, %c0_17] : memref<6x3xf32, #tpu.memory_space<vmem>>, vector<6x3xf32>
    tpu.vector_store %arg2[%c0_16, %c0_17], %32 {strides = array<i32>} : memref<6x3xf32, #tpu.memory_space<vmem>>, vector<6x3xf32>,
    return
  }
}

</mosaic_0001>

<bundles_post_ra>
// kernel: forward.1
= control target key start
LH: loop header
LB: loop body
LE: loop exit
PB: predicated region body
PF: predicated region fallthrough
CT: control target
= control target key end

     0   :  { %7 = vsyncpa [#allocation4], 0  ;;  %s543_s9 = smov [#allocation3]   ;;  %s601_s0 = inlined_call_operand.vmem [shape: f32[6,3], index: 0, kind: input, shape index: {}]   ;;  %s602_s1 = inlined_call_operand.hbm [shape: f32[128,384], index: 1, kind: input, shape index: {}]   ;;  %s603_s2 = inlined_call_operand.vmem [shape: f32[6,3], index: 2, kind: output, shape index: {}]  }
   0x1   :  { %s15_s10 = sshll.u32 %s543_s9, 4  ;;  %s519_s13 = scalar_lea.hbm %s602_s1, 6144  ;;  %s16_s10 = int_to_ptr.vmem [resolvable:$true] %s15_s10 }
   0x2   :  { %p520_p0 = scmp.ne.s32.totalorder %s602_s1, %s519_s13  ;;  %p523_p1 = scmp.lt.u32.totalorder %s519_s13, %s602_s1 }
   0x4   :  { %p525_p2 = pnand %p523_p1, %p520_p0 }
   0x6   :  { %528 = shalt.err (!%p525_p2)
}
   0x7   :  { %s529_s18 = scalar_lea.vmem %s16_s10, 6144  ;;  %p534_p4 = scmp.lt.s32.totalorder %s16_s10, %s16_s10 }
   0x8   :  { %p530_p3 = scmp.ne.s32.totalorder %s16_s10, %s529_s18  ;;  %p535_p5 = scmp.lt.s32.totalorder %s529_s18, %s529_s18 }
   0xa   :  { %p536_p6 = por %p535_p5, %p534_p4 }
   0xc   :  { %p537_p7 = pnand %p536_p6, %p530_p3 }
   0xe   :  { %540 = shalt.err (!%p537_p7)
}
   0xf   :  { %s544_s19 = smov 384   ;;  %s545_s20 = smov 24  }
  0x10   :  { %21 = dma.hbm_to_vmem [thread:$0]  %s602_s1, 6144, %s16_s10, [#allocation4], %s544_s19, %s544_s19, %s545_s20  }
  0x11   :  { %541 = dma.done.wait [#allocation4], 6144  }
  0x12   :  { %542 = vsyncadd [#allocation4], 4294961152  ;;  %v25_v0 = vlaneseq  ;;  %v546_v1 = vmov 0.0   ;;  %v35_v4 = vld [vmem:[#allocation3 + $0x8] sm:$0xff]  ;;  %v38_v5 = vld [vmem:[#allocation3 + $0x20] sm:$0xff]  ;;  %vm31_vm1 = vcmask 21504  }
  0x13   :  { %146 = vmatprep.mubr.f32.mxu0 %v546_v1  ;;  %v34_v6 = vld [vmem:[#allocation3] sm:$0xff]  ;;  %v453_v7 = vpack.c.bf16 %v38_v5, %v35_v4  ;;  %v37_v8 = vld [vmem:[#allocation3 + $0x18] sm:$0xff]  ;;  %v44_v10 = vld [vmem:[#allocation3 + $0x50] sm:$0xff]  ;;  %vm547_vm2 = vmmov 0   ;;  %v548_v59 = vmov 0.0|0.0   ;;  %vm295_vm4 = vcmask 64512  }
  0x14   :  { %v577_v2 = vand.u32 127, %v25_v0  ;;  %v41_v9 = vld [vmem:[#allocation3 + $0x38] sm:$0xff]  ;;  %v455_v11 = vpack.c.bf16 %v37_v8, %v34_v6  ;;  %v40_v13 = vld [vmem:[#allocation3 + $0x30] sm:$0xff]  ;;  %v43_v14 = vld [vmem:[#allocation3 + $0x48] sm:$0xff]  ;;  %440 = vmatprep.mubr.msk.f32.mxu1 %vm547_vm2, %v546_v1  ;;  %485 = vmatprep.subr.bf16.mxu1 %v548_v59 }
  0x15   :  { %v457_v12 = vpack.c.bf16 %v44_v10, %v41_v9  ;;  %v47_v15 = vld [vmem:[#allocation3 + $0x68] sm:$0xff]  ;;  %454 = vmatprep.subr.bf16.mxu0 %v453_v7  ;;  %v50_v16 = vld [vmem:[#allocation3 + $0x80] sm:$0xff]  ;;  %v459_v17 = vpack.c.bf16 %v43_v14, %v40_v13  ;;  %v49_v20 = vld [vmem:[#allocation3 + $0x78] sm:$0xff] }
  0x16   :  { %vm27_vm0 = vcmp.eq.s32.totalorder %v577_v2, 3  ;;  %456 = vmatpush1.bf16.msra.mxu0 %v455_v11  ;;  %v461_v18 = vpack.c.bf16 %v50_v16, %v47_v15  ;;  %v46_v19 = vld [vmem:[#allocation3 + $0x60] sm:$0xff]  ;;  %v53_v21 = vld [vmem:[#allocation3 + $0x98] sm:$0xff]  ;;  %v56_v22 = vld [vmem:[#allocation3 + $0xb0] sm:$0xff]  ;;  %vm293_vm3 = vcmp.lt.s32.totalorder %v577_v2, 6 }
  0x17   :  { %v28_v3 = vsel %vm27_vm0, 1.0, %v546_v1  ;;  %458 = vmatprep.subr.bf16.mxu0 %v457_v12  ;;  %v463_v23 = vpack.c.bf16 %v49_v20, %v46_v19  ;;  %v465_v24 = vpack.c.bf16 %v56_v22, %v53_v21  ;;  %v52_v25 = vld [vmem:[#allocation3 + $0x90] sm:$0xff]  ;;  %v55_v26 = vld [vmem:[#allocation3 + $0xa8] sm:$0xff]  ;;  %v62_v28 = vld [vmem:[#allocation3 + $0xe0] sm:$0xff] }
  0x18   :  { %29 = vst [vmem:[#allocation2] sm:$0xff] %v28_v3  ;;  %v59_v27 = vld [vmem:[#allocation3 + $0xc8] sm:$0xff]  ;;  %v30_v29 = vld [vmem:[%s601_s0] sm:$0x3f]  ;;  %v467_v30 = vpack.c.bf16 %v55_v26, %v52_v25  ;;  %v58_v32 = vld [vmem:[#allocation3 + $0xc0] sm:$0xff] }
  0x19   :  { %32 = vst.msk [vmem:[#allocation2] sm:$0x3f] %vm31_vm1, %v30_v29  ;;  %v469_v31 = vpack.c.bf16 %v62_v28, %v59_v27  ;;  %v61_v33 = vld [vmem:[#allocation3 + $0xd8] sm:$0xff]  ;;  %v68_v35 = vld [vmem:[#allocation3 + $0x110] sm:$0xff]  ;;  %v67_v39 = vld [vmem:[#allocation3 + $0x108] sm:$0xff] }
  0x1a   :  { %460 = vmatpush1.bf16.msra.mxu0 %v459_v17  ;;  %v65_v34 = vld [vmem:[#allocation3 + $0xf8] sm:$0xff]  ;;  %v471_v36 = vpack.c.bf16 %v61_v33, %v58_v32  ;;  %v64_v38 = vld [vmem:[#allocation3 + $0xf0] sm:$0xff]  ;;  %v71_v40 = vld [vmem:[#allocation3 + $0x128] sm:$0xff] }
  0x1b   :  { %462 = vmatprep.subr.bf16.mxu0 %v461_v18  ;;  %v473_v37 = vpack.c.bf16 %v68_v35, %v65_v34  ;;  %v74_v41 = vld [vmem:[#allocation3 + $0x140] sm:$0xff]  ;;  %v475_v42 = vpack.c.bf16 %v67_v39, %v64_v38  ;;  %v73_v45 = vld [vmem:[#allocation3 + $0x138] sm:$0xff]  ;;  %v80_v47 = vld [vmem:[#allocation3 + $0x170] sm:$0xff] }
  0x1c   :  { %v477_v43 = vpack.c.bf16 %v74_v41, %v71_v40  ;;  %v70_v44 = vld [vmem:[#allocation3 + $0x120] sm:$0xff]  ;;  %v77_v46 = vld [vmem:[#allocation3 + $0x158] sm:$0xff]  ;;  %v76_v50 = vld [vmem:[#allocation3 + $0x150] sm:$0xff] }
  0x1d   :  { %v479_v48 = vpack.c.bf16 %v73_v45, %v70_v44  ;;  %v481_v49 = vpack.c.bf16 %v80_v47, %v77_v46  ;;  %v79_v51 = vld [vmem:[#allocation3 + $0x168] sm:$0xff]  ;;  %v36_v56 = vld [vmem:[#allocation3 + $0x10] sm:$0xff]  ;;  %v42_v58 = vld [vmem:[#allocation3 + $0x40] sm:$0xff] }
  0x1e   :  { %464 = vmatpush1.bf16.msra.mxu0 %v463_v23  ;;  %v483_v52 = vpack.c.bf16 %v79_v51, %v76_v50  ;;  %v39_v57 = vld [vmem:[#allocation3 + $0x28] sm:$0xff]  ;;  %v45_v61 = vld [vmem:[#allocation3 + $0x58] sm:$0xff]  ;;  %v48_v63 = vld [vmem:[#allocation3 + $0x70] sm:$0xff] }
  0x1f   :  { %466 = vmatprep.subr.bf16.mxu0 %v465_v24  ;;  %v486_v60 = vpack.c.bf16 %v39_v57, %v36_v56  ;;  %v489_v62 = vpack.c.bf16 %v45_v61, %v42_v58  ;;  %v51_v0 = vld [vmem:[#allocation3 + $0x88] sm:$0xff]  ;;  %v54_v4 = vld [vmem:[#allocation3 + $0xa0] sm:$0xff]  ;;  %v57_v5 = vld [vmem:[#allocation3 + $0xb8] sm:$0xff] }
  0x20   :  { %v33_v53 = vld [vmem:[#allocation2] sm:$0xff]  ;;  %v492_v3 = vpack.c.bf16 %v51_v0, %v48_v63  ;;  %v495_v6 = vpack.c.bf16 %v57_v5, %v54_v4  ;;  %v60_v7 = vld [vmem:[#allocation3 + $0xd0] sm:$0xff]  ;;  %v63_v8 = vld [vmem:[#allocation3 + $0xe8] sm:$0xff] }
  0x21   :  { %487 = vmatpush3.bf16.msra.mxu1 %v486_v60  ;;  %v498_v9 = vpack.c.bf16 %v63_v8, %v60_v7  ;;  %v66_v10 = vld [vmem:[#allocation3 + $0x100] sm:$0xff]  ;;  %v69_v11 = vld [vmem:[#allocation3 + $0x118] sm:$0xff]  ;;  %v72_v13 = vld [vmem:[#allocation3 + $0x130] sm:$0xff] }
  0x22   :  { %468 = vmatpush1.bf16.msra.mxu0 %v467_v30  ;;  %488 = vmatprep.subr.bf16.mxu1 %v548_v59  ;;  %v501_v12 = vpack.c.bf16 %v69_v11, %v66_v10  ;;  %v75_v14 = vld [vmem:[#allocation3 + $0x148] sm:$0xff]  ;;  %v78_v16 = vld [vmem:[#allocation3 + $0x160] sm:$0xff]  ;;  %v81_v17 = vld [vmem:[#allocation3 + $0x178] sm:$0xff] }
  0x23   :  { %470 = vmatprep.subr.bf16.mxu0 %v469_v31  ;;  %v504_v15 = vpack.c.bf16 %v75_v14, %v72_v13  ;;  %v507_v18 = vpack.c.bf16 %v81_v17, %v78_v16 }
  0x25   :  { %490 = vmatpush3.bf16.msra.mxu1 %v489_v62 }
  0x26   :  { %472 = vmatpush1.bf16.msra.mxu0 %v471_v36  ;;  %491 = vmatprep.subr.bf16.mxu1 %v548_v59 }
  0x27   :  { %474 = vmatprep.subr.bf16.mxu0 %v473_v37 }
  0x29   :  { %493 = vmatpush3.bf16.msra.mxu1 %v492_v3 }
  0x2a   :  { %476 = vmatpush1.bf16.msra.mxu0 %v475_v42  ;;  %494 = vmatprep.subr.bf16.mxu1 %v548_v59 }
  0x2b   :  { %478 = vmatprep.subr.bf16.mxu0 %v477_v43 }
  0x2d   :  { %496 = vmatpush3.bf16.msra.mxu1 %v495_v6 }
  0x2e   :  { %480 = vmatpush1.bf16.msra.mxu0 %v479_v48  ;;  %497 = vmatprep.subr.bf16.mxu1 %v548_v59 }
  0x2f   :  { %482 = vmatprep.subr.bf16.mxu0 %v481_v49 }
  0x31   :  { %499 = vmatpush3.bf16.msra.mxu1 %v498_v9 }
  0x32   :  { %484 = vmatpush1.bf16.msra.mxu0 %v483_v52  ;;  %500 = vmatprep.subr.bf16.mxu1 %v548_v59 }
  0x33   :  { %443 = vmatprep.subr.mxu0 %v546_v1 }
  0x35   :  { %147 = vmatmul.mubr.f32.vlgmr.msra.gmra.mrb[0].mxu0 %v33_v53  ;;  %502 = vmatpush3.bf16.msra.mxu1 %v501_v12 }
  0x36   :  { %445 = vmatprep.mubr.msk.f32.mxu0 %vm547_vm2, %v546_v1  ;;  %503 = vmatprep.subr.bf16.mxu1 %v548_v59 }
  0x39   :  { %505 = vmatpush3.bf16.msra.mxu1 %v504_v15 }
  0x3a   :  { %506 = vmatprep.subr.bf16.mxu1 %v548_v59 }
  0x3d   :  { %508 = vmatpush3.bf16.msra.mxu1 %v507_v18 }
  0x3e   :  { %448 = vmatprep.subr.mxu1 %v546_v1 }
  0x40   :  { %441 = vmatmul.mubr.f32.vlgmr.msra.gmra.mrb[0].mxu1 %v33_v53 }
  0x41   :  { %450 = vmatprep.mubr.msk.f32.mxu1 %vm547_vm2, %v546_v1 }
 0x108   :  { %v148_v54 = vpop.f32.mrb[0].mxu0 }
 0x109   :  { %v150_v55 = vpop.f32.mrb[1].mxu0 }
 0x10a   :  { %444 = vmatpush3.xpose.msra.mxu0 %v150_v55 }
 0x10d   :  { %446 = vmatmul.mubr.f32.vlgmr.msra.gmra.mrb[2].mxu0 %v148_v54 }
 0x113   :  { %v219_v28 = vpop.f32.mrb[0].mxu1 }
 0x114   :  { %v442_v29 = vpop.f32.mrb[1].mxu1  ;;  %449 = vmatpush3.msra.mxu1 %v219_v28 }
 0x1e0   :  { %v289_v19 = vpop.f32.mrb[2].mxu0 }
 0x1e1   :  { %v294_v20 = vsel %vm293_vm3, %v289_v19, -1e+30  ;;  %v447_v21 = vpop.f32.mrb[3].mxu0 }
 0x1e2   :  { %v296_v22 = vsel %vm295_vm4, %v294_v20, -inf }
 0x1e3   :  { %297 = vmax.xlane.f32.xlu0 %v296_v22 }
 0x270   :  { %v298_v23 = vpop.xlane.xlu0 %297 }
 0x271   :  { %v299_v24 = vsub.f32 %v294_v20, %v298_v23 }
 0x273   :  { %v300_v25 = vmul.f32 1.442695, %v299_v24 }
 0x275   :  { %515 = vpow2.f32 %v300_v25 }
 0x27f   :  { %v516_v26 = vpop.eup %515 }
 0x280   :  { %v302_v27 = vsel %vm295_vm4, %v516_v26, 0.0 }
 0x281   :  { %303 = vadd.xlane.f32.xlu0 %v302_v27 }
 0x30e   :  { %v304_v1 = vpop.xlane.xlu0 %303 }
 0x30f   :  { %517 = vrcp.f32 %v304_v1 }
 0x319   :  { %v518_v2 = vpop.eup %517 }
 0x31a   :  { %v306_v30 = vmul.f32 %v518_v2, %v516_v26 }
 0x31c   :  { %451 = vmatmul.mubr.msk.f32.vlgmr.msra.gmra.mrb[2].mxu1 %vm295_vm4, %v306_v30 }
 0x3ef   :  { %v376_v31 = vpop.f32.mrb[2].mxu1 }
 0x3f0   :  { %380 = vst.msk [vmem:[%s603_s2] sm:$0x3f] %vm31_vm1, %v376_v31  ;;  %v452_v32 = vpop.f32.mrb[3].mxu1 }
 0x3f1   :  { %385 = vsyncpa [#allocation4], 1 }

</bundles_post_ra>
